<compile_context>
chip_gen: v6e
topology: v6e:2x2x1
jax: 0.10.0
libtpu: 0.0.40
codegen_flags: <defaults>
</compile_context>

<pallas_src>
import jax
import jax.numpy as jnp
from jax.experimental import pallas as pl
from jax.experimental.pallas import tpu as pltpu


def _round_up(n, m):
    return ((n + m - 1) // m) * m


def rnn_net_kernel(x_ref,    # (S*Bp, SEG) bf16  time-major rows (row = t*Bp + b), D zero-padded
                   w_ref,    # (5*SEG, H)  bf16  [wih0^T | whh0^T | wih1^T | whh1^T | wfc^T(pad)]
                   b_ref,    # (3*Bp, H)   f32   [b0 | b1 | bfc(pad)], pre-broadcast over Bp rows
                   out_ref):  # (B, 2)     f32   softmax probabilities
    f32, bf16 = jnp.float32, jnp.bfloat16
    seg = w_ref.shape[0] // 5
    H = w_ref.shape[1]
    b_pad = b_ref.shape[0] // 3
    S = x_ref.shape[0] // b_pad
    B = out_ref.shape[0]

    # Static slab slices; every segment start is sublane-tile aligned
    # (multiples of 32 rows for bf16, multiples of 8 rows for f32).
    w_ih0 = w_ref[0 * seg:1 * seg, :]
    w_hh0 = w_ref[1 * seg:2 * seg, :]
    w_ih1 = w_ref[2 * seg:3 * seg, :]
    w_hh1 = w_ref[3 * seg:4 * seg, :]
    w_fc = w_ref[4 * seg:5 * seg, :]
    b0 = b_ref[0 * b_pad:1 * b_pad, :]
    b1 = b_ref[1 * b_pad:2 * b_pad, :]
    bfc = b_ref[2 * b_pad:3 * b_pad, :]

    # Layer-0 input projection for ALL timesteps as one batched MXU matmul
    # (non-recurrent, hoisted out of the recurrence): (S*Bp, H) f32.
    xp = jnp.dot(x_ref[...], w_ih0, preferred_element_type=f32)

    h0 = jnp.zeros((b_pad, H), f32)
    h1 = jnp.zeros((b_pad, H), f32)

    # Fused 2-layer tanh recurrence, fully unrolled (S small and static).
    # Bp == 8 makes each xp slice a whole sublane group; the h1 matmul (+b1) is
    # kept a separate term so it issues while the pre0->tanh chain is in flight.
    for t in range(S):
        pre0 = xp[t * b_pad:(t + 1) * b_pad, :] + b0 + jnp.dot(
            h0.astype(bf16), w_hh0, preferred_element_type=f32)
        h0 = jnp.tanh(pre0)
        pre1 = (jnp.dot(h0.astype(bf16), w_ih1, preferred_element_type=f32)
                + (jnp.dot(h1.astype(bf16), w_hh1, preferred_element_type=f32) + b1))
        h1 = jnp.tanh(pre1)

    # TODO(synk): nn.Dropout before fc is identity in eval mode; training-mode
    # dropout (PRNG mask) is intentionally not emulated.

    # fc + softmax(dim=1) on the last hidden state of the top layer.
    logits = (jnp.dot(h1.astype(bf16), w_fc, preferred_element_type=f32) + bfc)[:, :2]
    m = jnp.max(logits, axis=1, keepdims=True)
    e = jnp.exp(logits - m)
    s = jnp.sum(e, axis=1, keepdims=True)
    # exact reciprocal keeps softmax rows summing to 1 within f32 precision
    probs = e * pl.reciprocal(s, approx=False)
    out_ref[...] = probs[:B, :]


def pack_params(params, b_pad=8):
    """One-time packing (hoisted out of the per-call path): transpose / cast /
    pad all weights into a single bf16 slab and all biases into a single f32
    slab, so the kernel takes 2 parameter operands instead of 8."""
    f32, bf16 = jnp.float32, jnp.bfloat16
    H = params["whh0"].shape[0]
    D = params["wih0"].shape[1]
    seg = _round_up(max(D, H), 32)   # bf16 sublane-tile aligned segment height

    def pad2(a, rows, cols):
        return jnp.pad(a, ((0, rows - a.shape[0]), (0, cols - a.shape[1])))

    w_slab = jnp.concatenate([
        pad2(params["wih0"].T, seg, H),    # (D, H) -> (seg, H), zero rows beyond D
        pad2(params["whh0"].T, seg, H),
        pad2(params["wih1"].T, seg, H),
        pad2(params["whh1"].T, seg, H),
        pad2(params["wfc"].T, seg, H),     # (H, 2) -> (seg, H), zero cols beyond 2
    ], axis=0).astype(bf16)                # (5*seg, H) bf16

    b0 = (params["bih0"] + params["bhh0"]).astype(f32)
    b1 = (params["bih1"] + params["bhh1"]).astype(f32)
    bfc = jnp.pad(params["bfc"].astype(f32), (0, H - params["bfc"].shape[0]))
    b_slab = jnp.concatenate([
        jnp.broadcast_to(b0, (b_pad, H)),
        jnp.broadcast_to(b1, (b_pad, H)),
        jnp.broadcast_to(bfc, (b_pad, H)),
    ], axis=0)                             # (3*b_pad, H) f32

    return {"w": w_slab, "b": b_slab}


def rnn_net_forward(x_bsd, packed):
    """x_bsd: (batch, seq, input_dim) f32, PyTorch batch-first convention.
    `packed` is the output of pack_params (built once, reused every call)."""
    B, S, D = x_bsd.shape
    w_slab, b_slab = packed["w"], packed["b"]
    seg = w_slab.shape[0] // 5
    H = w_slab.shape[1]
    b_pad = b_slab.shape[0] // 3

    # Time-major, batch padded to the f32 sublane group and input dim padded to
    # the slab segment width. Under jit this pad/transpose/cast is one fusion.
    x_tm = jnp.transpose(x_bsd, (1, 0, 2))                        # (S, B, D)
    x_tm = jnp.pad(x_tm, ((0, 0), (0, b_pad - B), (0, seg - D)))  # (S, Bp, seg)
    x_tm = x_tm.reshape(S * b_pad, seg).astype(jnp.bfloat16)

    flops = (2 * S * b_pad * seg * H          # hoisted input projection
             + 2 * S * 3 * b_pad * H * H      # recurrent matmuls
             + 2 * b_pad * H * H)             # fc
    cost = pl.CostEstimate(
        flops=flops,
        transcendentals=2 * S * b_pad * H + 2 * b_pad,
        bytes_accessed=x_tm.size * 2 + w_slab.size * 2 + b_slab.size * 4 + B * 2 * 4,
    )

    vmem = pl.BlockSpec(memory_space=pltpu.MemorySpace.VMEM)
    return pl.pallas_call(
        rnn_net_kernel,
        out_shape=jax.ShapeDtypeStruct((B, 2), jnp.float32),
        in_specs=[vmem, vmem, vmem],
        out_specs=vmem,
        cost_estimate=cost,
    )(x_tm, w_slab, b_slab)


rnn_net_forward_jit = jax.jit(rnn_net_forward)


def rnn_net_reference(x_bsd, params):
    """Pure-JAX f32 reference matching PyTorch RnnNet.forward (eval mode)."""
    B, S, _ = x_bsd.shape
    H = params["whh0"].shape[0]
    h0 = jnp.zeros((B, H), jnp.float32)
    h1 = jnp.zeros((B, H), jnp.float32)
    for t in range(S):
        x_t = x_bsd[:, t, :]
        h0 = jnp.tanh(x_t @ params["wih0"].T + h0 @ params["whh0"].T
                      + params["bih0"] + params["bhh0"])
        h1 = jnp.tanh(h0 @ params["wih1"].T + h1 @ params["whh1"].T
                      + params["bih1"] + params["bhh1"])
    logits = h1 @ params["wfc"].T + params["bfc"]
    return jax.nn.softmax(logits, axis=1)


def init_params(key, input_dim, hidden_dim):
    """Deterministic init mirroring PyTorch shapes: uniform(-1/sqrt(H), 1/sqrt(H))."""
    bound = 1.0 / jnp.sqrt(jnp.float32(hidden_dim))
    ks = jax.random.split(key, 10)
    u = lambda k, shape: jax.random.uniform(k, shape, jnp.float32, -bound, bound)
    return {
        "wih0": u(ks[0], (hidden_dim, input_dim)),   # W_ih_l0
        "whh0": u(ks[1], (hidden_dim, hidden_dim)),  # W_hh_l0
        "bih0": u(ks[2], (hidden_dim,)),
        "bhh0": u(ks[3], (hidden_dim,)),
        "wih1": u(ks[4], (hidden_dim, hidden_dim)),  # W_ih_l1
        "whh1": u(ks[5], (hidden_dim, hidden_dim)),  # W_hh_l1
        "bih1": u(ks[6], (hidden_dim,)),
        "bhh1": u(ks[7], (hidden_dim,)),
        "wfc":  u(ks[8], (2, hidden_dim)),           # fc.weight
        "bfc":  u(ks[9], (2,)),                      # fc.bias
    }


if __name__ == "__main__":
    B, S, D, H = 2, 8, 4, 32
    key = jax.random.PRNGKey(0)
    k_x, k_p = jax.random.split(key)
    x = jax.random.normal(k_x, (B, S, D), jnp.float32)
    params = init_params(k_p, D, H)

    # One-time parameter packing (hoisted off the per-call path).
    packed = jax.tree_util.tree_map(jax.block_until_ready, pack_params(params))

    out = jax.block_until_ready(rnn_net_forward_jit(x, packed))

    assert out.shape == (B, 2)
    assert bool(jnp.all(jnp.isfinite(out)))
    # softmax rows sum to 1 (exact reciprocal, f32 accumulation)
    assert bool(jnp.all(jnp.abs(jnp.sum(out, axis=1) - 1.0) < 1e-5))
    # bf16 MXU operands with f32 accumulation/tanh: small drift vs f32 reference
    # (drift compounds with S; at S=8 it stays well inside this envelope).
    ref = rnn_net_reference(x, params)
    assert bool(jnp.max(jnp.abs(out - ref)) < 5e-2)
    print("KERNEL_OK")
</pallas_src>

<mosaic_0001>
module attributes {stable_mosaic.version = 11 : i64} {
  func.func @rnn_net_kernel(%arg0: memref<64x32xbf16, #tpu.memory_space<vmem>>, %arg1: memref<160x32xbf16, #tpu.memory_space<vmem>>, %arg2: memref<24x32xf32, #tpu.memory_space<vmem>>, %arg3: memref<2x2xf32, #tpu.memory_space<vmem>>) attributes {dimension_semantics = [], scalar_prefetch = 0 : i64, scratch_operands = 0 : i64, tpu.core_type = #tpu.core_type<tc>} {
    %c0 = arith.constant 0 : index
    %c0_0 = arith.constant 0 : index
    %0 = vector.load %arg1[%c0, %c0_0] : memref<160x32xbf16, #tpu.memory_space<vmem>>, vector<32x32xbf16>
    %c32 = arith.constant 32 : index
    %c0_1 = arith.constant 0 : index
    %1 = vector.load %arg1[%c32, %c0_1] : memref<160x32xbf16, #tpu.memory_space<vmem>>, vector<32x32xbf16>
    %c64 = arith.constant 64 : index
    %c0_2 = arith.constant 0 : index
    %2 = vector.load %arg1[%c64, %c0_2] : memref<160x32xbf16, #tpu.memory_space<vmem>>, vector<32x32xbf16>
    %c96 = arith.constant 96 : index
    %c0_3 = arith.constant 0 : index
    %3 = vector.load %arg1[%c96, %c0_3] : memref<160x32xbf16, #tpu.memory_space<vmem>>, vector<32x32xbf16>
    %c128 = arith.constant 128 : index
    %c0_4 = arith.constant 0 : index
    %4 = vector.load %arg1[%c128, %c0_4] : memref<160x32xbf16, #tpu.memory_space<vmem>>, vector<32x32xbf16>
    %c0_5 = arith.constant 0 : index
    %c0_6 = arith.constant 0 : index
    %5 = vector.load %arg2[%c0_5, %c0_6] : memref<24x32xf32, #tpu.memory_space<vmem>>, vector<8x32xf32>
    %c8 = arith.constant 8 : index
    %c0_7 = arith.constant 0 : index
    %6 = vector.load %arg2[%c8, %c0_7] : memref<24x32xf32, #tpu.memory_space<vmem>>, vector<8x32xf32>
    %c16 = arith.constant 16 : index
    %c0_8 = arith.constant 0 : index
    %7 = vector.load %arg2[%c16, %c0_8] : memref<24x32xf32, #tpu.memory_space<vmem>>, vector<8x32xf32>
    %c0_9 = arith.constant 0 : index
    %c0_10 = arith.constant 0 : index
    %8 = vector.load %arg0[%c0_9, %c0_10] : memref<64x32xbf16, #tpu.memory_space<vmem>>, vector<64x32xbf16>
    %cst = arith.constant dense<0.000000e+00> : vector<64x32xf32>
    %9 = tpu.matmul %8, %0, %cst {dimension_numbers = #tpu.dot_dimension_numbers<[1], [0], [0], [1], [0, 0, 1, 1], [], []>} : vector<64x32xbf16>, vector<32x32xbf16>, vector<64x32xf32> -> vector<64x32xf32>
    %cst_11 = arith.constant 0.000000e+00 : f32
    %10 = vector.broadcast %cst_11 : f32 to vector<8x32xf32>
    %cst_12 = arith.constant 0.000000e+00 : f32
    %11 = vector.broadcast %cst_12 : f32 to vector<8x32xf32>
    %12 = vector.extract_strided_slice %9 {offsets = [0, 0], sizes = [8, 32], strides = [1, 1]} : vector<64x32xf32> to vector<8x32xf32>
    %13 = arith.addf %12, %5 : vector<8x32xf32>
    %14 = arith.truncf %10 : vector<8x32xf32> to vector<8x32xbf16>
    %cst_13 = arith.constant dense<0.000000e+00> : vector<8x32xf32>
    %15 = tpu.matmul %14, %1, %cst_13 {dimension_numbers = #tpu.dot_dimension_numbers<[1], [0], [0], [1], [0, 0, 1, 1], [], []>} : vector<8x32xbf16>, vector<32x32xbf16>, vector<8x32xf32> -> vector<8x32xf32>
    %16 = arith.addf %13, %15 : vector<8x32xf32>
    %17 = math.tanh %16 : vector<8x32xf32>
    %18 = arith.truncf %17 : vector<8x32xf32> to vector<8x32xbf16>
    %cst_14 = arith.constant dense<0.000000e+00> : vector<8x32xf32>
    %19 = tpu.matmul %18, %2, %cst_14 {dimension_numbers = #tpu.dot_dimension_numbers<[1], [0], [0], [1], [0, 0, 1, 1], [], []>} : vector<8x32xbf16>, vector<32x32xbf16>, vector<8x32xf32> -> vector<8x32xf32>
    %20 = arith.truncf %11 : vector<8x32xf32> to vector<8x32xbf16>
    %cst_15 = arith.constant dense<0.000000e+00> : vector<8x32xf32>
    %21 = tpu.matmul %20, %3, %cst_15 {dimension_numbers = #tpu.dot_dimension_numbers<[1], [0], [0], [1], [0, 0, 1, 1], [], []>} : vector<8x32xbf16>, vector<32x32xbf16>, vector<8x32xf32> -> vector<8x32xf32>
    %22 = arith.addf %21, %6 : vector<8x32xf32>
    %23 = arith.addf %19, %22 : vector<8x32xf32>
    %24 = math.tanh %23 : vector<8x32xf32>
    %25 = vector.extract_strided_slice %9 {offsets = [8, 0], sizes = [8, 32], strides = [1, 1]} : vector<64x32xf32> to vector<8x32xf32>
    %26 = arith.addf %25, %5 : vector<8x32xf32>
    %27 = arith.truncf %17 : vector<8x32xf32> to vector<8x32xbf16>
    %cst_16 = arith.constant dense<0.000000e+00> : vector<8x32xf32>
    %28 = tpu.matmul %27, %1, %cst_16 {dimension_numbers = #tpu.dot_dimension_numbers<[1], [0], [0], [1], [0, 0, 1, 1], [], []>} : vector<8x32xbf16>, vector<32x32xbf16>, vector<8x32xf32> -> vector<8x32xf32>
    %29 = arith.addf %26, %28 : vector<8x32xf32>
    %30 = math.tanh %29 : vector<8x32xf32>
    %31 = arith.truncf %30 : vector<8x32xf32> to vector<8x32xbf16>
    %cst_17 = arith.constant dense<0.000000e+00> : vector<8x32xf32>
    %32 = tpu.matmul %31, %2, %cst_17 {dimension_numbers = #tpu.dot_dimension_numbers<[1], [0], [0], [1], [0, 0, 1, 1], [], []>} : vector<8x32xbf16>, vector<32x32xbf16>, vector<8x32xf32> -> vector<8x32xf32>
    %33 = arith.truncf %24 : vector<8x32xf32> to vector<8x32xbf16>
    %cst_18 = arith.constant dense<0.000000e+00> : vector<8x32xf32>
    %34 = tpu.matmul %33, %3, %cst_18 {dimension_numbers = #tpu.dot_dimension_numbers<[1], [0], [0], [1], [0, 0, 1, 1], [], []>} : vector<8x32xbf16>, vector<32x32xbf16>, vector<8x32xf32> -> vector<8x32xf32>
    %35 = arith.addf %34, %6 : vector<8x32xf32>
    %36 = arith.addf %32, %35 : vector<8x32xf32>
    %37 = math.tanh %36 : vector<8x32xf32>
    %38 = vector.extract_strided_slice %9 {offsets = [16, 0], sizes = [8, 32], strides = [1, 1]} : vector<64x32xf32> to vector<8x32xf32>
    %39 = arith.addf %38, %5 : vector<8x32xf32>
    %40 = arith.truncf %30 : vector<8x32xf32> to vector<8x32xbf16>
    %cst_19 = arith.constant dense<0.000000e+00> : vector<8x32xf32>
    %41 = tpu.matmul %40, %1, %cst_19 {dimension_numbers = #tpu.dot_dimension_numbers<[1], [0], [0], [1], [0, 0, 1, 1], [], []>} : vector<8x32xbf16>, vector<32x32xbf16>, vector<8x32xf32> -> vector<8x32xf32>
    %42 = arith.addf %39, %41 : vector<8x32xf32>
    %43 = math.tanh %42 : vector<8x32xf32>
    %44 = arith.truncf %43 : vector<8x32xf32> to vector<8x32xbf16>
    %cst_20 = arith.constant dense<0.000000e+00> : vector<8x32xf32>
    %45 = tpu.matmul %44, %2, %cst_20 {dimension_numbers = #tpu.dot_dimension_numbers<[1], [0], [0], [1], [0, 0, 1, 1], [], []>} : vector<8x32xbf16>, vector<32x32xbf16>, vector<8x32xf32> -> vector<8x32xf32>
    %46 = arith.truncf %37 : vector<8x32xf32> to vector<8x32xbf16>
    %cst_21 = arith.constant dense<0.000000e+00> : vector<8x32xf32>
    %47 = tpu.matmul %46, %3, %cst_21 {dimension_numbers = #tpu.dot_dimension_numbers<[1], [0], [0], [1], [0, 0, 1, 1], [], []>} : vector<8x32xbf16>, vector<32x32xbf16>, vector<8x32xf32> -> vector<8x32xf32>
    %48 = arith.addf %47, %6 : vector<8x32xf32>
    %49 = arith.addf %45, %48 : vector<8x32xf32>
    %50 = math.tanh %49 : vector<8x32xf32>
    %51 = vector.extract_strided_slice %9 {offsets = [24, 0], sizes = [8, 32], strides = [1, 1]} : vector<64x32xf32> to vector<8x32xf32>
    %52 = arith.addf %51, %5 : vector<8x32xf32>
    %53 = arith.truncf %43 : vector<8x32xf32> to vector<8x32xbf16>
    %cst_22 = arith.constant dense<0.000000e+00> : vector<8x32xf32>
    %54 = tpu.matmul %53, %1, %cst_22 {dimension_numbers = #tpu.dot_dimension_numbers<[1], [0], [0], [1], [0, 0, 1, 1], [], []>} : vector<8x32xbf16>, vector<32x32xbf16>, vector<8x32xf32> -> vector<8x32xf32>
    %55 = arith.addf %52, %54 : vector<8x32xf32>
    %56 = math.tanh %55 : vector<8x32xf32>
    %57 = arith.truncf %56 : vector<8x32xf32> to vector<8x32xbf16>
    %cst_23 = arith.constant dense<0.000000e+00> : vector<8x32xf32>
    %58 = tpu.matmul %57, %2, %cst_23 {dimension_numbers = #tpu.dot_dimension_numbers<[1], [0], [0], [1], [0, 0, 1, 1], [], []>} : vector<8x32xbf16>, vector<32x32xbf16>, vector<8x32xf32> -> vector<8x32xf32>
    %59 = arith.truncf %50 : vector<8x32xf32> to vector<8x32xbf16>
    %cst_24 = arith.constant dense<0.000000e+00> : vector<8x32xf32>
    %60 = tpu.matmul %59, %3, %cst_24 {dimension_numbers = #tpu.dot_dimension_numbers<[1], [0], [0], [1], [0, 0, 1, 1], [], []>} : vector<8x32xbf16>, vector<32x32xbf16>, vector<8x32xf32> -> vector<8x32xf32>
    %61 = arith.addf %60, %6 : vector<8x32xf32>
    %62 = arith.addf %58, %61 : vector<8x32xf32>
    %63 = math.tanh %62 : vector<8x32xf32>
    %64 = vector.extract_strided_slice %9 {offsets = [32, 0], sizes = [8, 32], strides = [1, 1]} : vector<64x32xf32> to vector<8x32xf32>
    %65 = arith.addf %64, %5 : vector<8x32xf32>
    %66 = arith.truncf %56 : vector<8x32xf32> to vector<8x32xbf16>
    %cst_25 = arith.constant dense<0.000000e+00> : vector<8x32xf32>
    %67 = tpu.matmul %66, %1, %cst_25 {dimension_numbers = #tpu.dot_dimension_numbers<[1], [0], [0], [1], [0, 0, 1, 1], [], []>} : vector<8x32xbf16>, vector<32x32xbf16>, vector<8x32xf32> -> vector<8x32xf32>
    %68 = arith.addf %65, %67 : vector<8x32xf32>
    %69 = math.tanh %68 : vector<8x32xf32>
    %70 = arith.truncf %69 : vector<8x32xf32> to vector<8x32xbf16>
    %cst_26 = arith.constant dense<0.000000e+00> : vector<8x32xf32>
    %71 = tpu.matmul %70, %2, %cst_26 {dimension_numbers = #tpu.dot_dimension_numbers<[1], [0], [0], [1], [0, 0, 1, 1], [], []>} : vector<8x32xbf16>, vector<32x32xbf16>, vector<8x32xf32> -> vector<8x32xf32>
    %72 = arith.truncf %63 : vector<8x32xf32> to vector<8x32xbf16>
    %cst_27 = arith.constant dense<0.000000e+00> : vector<8x32xf32>
    %73 = tpu.matmul %72, %3, %cst_27 {dimension_numbers = #tpu.dot_dimension_numbers<[1], [0], [0], [1], [0, 0, 1, 1], [], []>} : vector<8x32xbf16>, vector<32x32xbf16>, vector<8x32xf32> -> vector<8x32xf32>
    %74 = arith.addf %73, %6 : vector<8x32xf32>
    %75 = arith.addf %71, %74 : vector<8x32xf32>
    %76 = math.tanh %75 : vector<8x32xf32>
    %77 = vector.extract_strided_slice %9 {offsets = [40, 0], sizes = [8, 32], strides = [1, 1]} : vector<64x32xf32> to vector<8x32xf32>
    %78 = arith.addf %77, %5 : vector<8x32xf32>
    %79 = arith.truncf %69 : vector<8x32xf32> to vector<8x32xbf16>
    %cst_28 = arith.constant dense<0.000000e+00> : vector<8x32xf32>
    %80 = tpu.matmul %79, %1, %cst_28 {dimension_numbers = #tpu.dot_dimension_numbers<[1], [0], [0], [1], [0, 0, 1, 1], [], []>} : vector<8x32xbf16>, vector<32x32xbf16>, vector<8x32xf32> -> vector<8x32xf32>
    %81 = arith.addf %78, %80 : vector<8x32xf32>
    %82 = math.tanh %81 : vector<8x32xf32>
    %83 = arith.truncf %82 : vector<8x32xf32> to vector<8x32xbf16>
    %cst_29 = arith.constant dense<0.000000e+00> : vector<8x32xf32>
    %84 = tpu.matmul %83, %2, %cst_29 {dimension_numbers = #tpu.dot_dimension_numbers<[1], [0], [0], [1], [0, 0, 1, 1], [], []>} : vector<8x32xbf16>, vector<32x32xbf16>, vector<8x32xf32> -> vector<8x32xf32>
    %85 = arith.truncf %76 : vector<8x32xf32> to vector<8x32xbf16>
    %cst_30 = arith.constant dense<0.000000e+00> : vector<8x32xf32>
    %86 = tpu.matmul %85, %3, %cst_30 {dimension_numbers = #tpu.dot_dimension_numbers<[1], [0], [0], [1], [0, 0, 1, 1], [], []>} : vector<8x32xbf16>, vector<32x32xbf16>, vector<8x32xf32> -> vector<8x32xf32>
    %87 = arith.addf %86, %6 : vector<8x32xf32>
    %88 = arith.addf %84, %87 : vector<8x32xf32>
    %89 = math.tanh %88 : vector<8x32xf32>
    %90 = vector.extract_strided_slice %9 {offsets = [48, 0], sizes = [8, 32], strides = [1, 1]} : vector<64x32xf32> to vector<8x32xf32>
    %91 = arith.addf %90, %5 : vector<8x32xf32>
    %92 = arith.truncf %82 : vector<8x32xf32> to vector<8x32xbf16>
    %cst_31 = arith.constant dense<0.000000e+00> : vector<8x32xf32>
    %93 = tpu.matmul %92, %1, %cst_31 {dimension_numbers = #tpu.dot_dimension_numbers<[1], [0], [0], [1], [0, 0, 1, 1], [], []>} : vector<8x32xbf16>, vector<32x32xbf16>, vector<8x32xf32> -> vector<8x32xf32>
    %94 = arith.addf %91, %93 : vector<8x32xf32>
    %95 = math.tanh %94 : vector<8x32xf32>
    %96 = arith.truncf %95 : vector<8x32xf32> to vector<8x32xbf16>
    %cst_32 = arith.constant dense<0.000000e+00> : vector<8x32xf32>
    %97 = tpu.matmul %96, %2, %cst_32 {dimension_numbers = #tpu.dot_dimension_numbers<[1], [0], [0], [1], [0, 0, 1, 1], [], []>} : vector<8x32xbf16>, vector<32x32xbf16>, vector<8x32xf32> -> vector<8x32xf32>
    %98 = arith.truncf %89 : vector<8x32xf32> to vector<8x32xbf16>
    %cst_33 = arith.constant dense<0.000000e+00> : vector<8x32xf32>
    %99 = tpu.matmul %98, %3, %cst_33 {dimension_numbers = #tpu.dot_dimension_numbers<[1], [0], [0], [1], [0, 0, 1, 1], [], []>} : vector<8x32xbf16>, vector<32x32xbf16>, vector<8x32xf32> -> vector<8x32xf32>
    %100 = arith.addf %99, %6 : vector<8x32xf32>
    %101 = arith.addf %97, %100 : vector<8x32xf32>
    %102 = math.tanh %101 : vector<8x32xf32>
    %103 = vector.extract_strided_slice %9 {offsets = [56, 0], sizes = [8, 32], strides = [1, 1]} : vector<64x32xf32> to vector<8x32xf32>
    %104 = arith.addf %103, %5 : vector<8x32xf32>
    %105 = arith.truncf %95 : vector<8x32xf32> to vector<8x32xbf16>
    %cst_34 = arith.constant dense<0.000000e+00> : vector<8x32xf32>
    %106 = tpu.matmul %105, %1, %cst_34 {dimension_numbers = #tpu.dot_dimension_numbers<[1], [0], [0], [1], [0, 0, 1, 1], [], []>} : vector<8x32xbf16>, vector<32x32xbf16>, vector<8x32xf32> -> vector<8x32xf32>
    %107 = arith.addf %104, %106 : vector<8x32xf32>
    %108 = math.tanh %107 : vector<8x32xf32>
    %109 = arith.truncf %108 : vector<8x32xf32> to vector<8x32xbf16>
    %cst_35 = arith.constant dense<0.000000e+00> : vector<8x32xf32>
    %110 = tpu.matmul %109, %2, %cst_35 {dimension_numbers = #tpu.dot_dimension_numbers<[1], [0], [0], [1], [0, 0, 1, 1], [], []>} : vector<8x32xbf16>, vector<32x32xbf16>, vector<8x32xf32> -> vector<8x32xf32>
    %111 = arith.truncf %102 : vector<8x32xf32> to vector<8x32xbf16>
    %cst_36 = arith.constant dense<0.000000e+00> : vector<8x32xf32>
    %112 = tpu.matmul %111, %3, %cst_36 {dimension_numbers = #tpu.dot_dimension_numbers<[1], [0], [0], [1], [0, 0, 1, 1], [], []>} : vector<8x32xbf16>, vector<32x32xbf16>, vector<8x32xf32> -> vector<8x32xf32>
    %113 = arith.addf %112, %6 : vector<8x32xf32>
    %114 = arith.addf %110, %113 : vector<8x32xf32>
    %115 = math.tanh %114 : vector<8x32xf32>
    %116 = arith.truncf %115 : vector<8x32xf32> to vector<8x32xbf16>
    %cst_37 = arith.constant dense<0.000000e+00> : vector<8x32xf32>
    %117 = tpu.matmul %116, %4, %cst_37 {dimension_numbers = #tpu.dot_dimension_numbers<[1], [0], [0], [1], [0, 0, 1, 1], [], []>} : vector<8x32xbf16>, vector<32x32xbf16>, vector<8x32xf32> -> vector<8x32xf32>
    %118 = arith.addf %117, %7 : vector<8x32xf32>
    %119 = vector.extract_strided_slice %118 {offsets = [0, 0], sizes = [8, 2], strides = [1, 1]} : vector<8x32xf32> to vector<8x2xf32>
    %cst_38 = arith.constant dense<0xFF800000> : vector<8xf32>
    %120 = vector.multi_reduction <maximumf>, %119, %cst_38 [1] : vector<8x2xf32> to vector<8xf32>
    %121 = vector.shape_cast %120 : vector<8xf32> to vector<8x1xf32>
    %122 = vector.broadcast %121 : vector<8x1xf32> to vector<8x2xf32>
    %123 = arith.subf %119, %122 : vector<8x2xf32>
    %124 = math.exp %123 : vector<8x2xf32>
    %cst_39 = arith.constant dense<0.000000e+00> : vector<8xf32>
    %125 = vector.multi_reduction <add>, %124, %cst_39 [1] : vector<8x2xf32> to vector<8xf32>
    %126 = vector.shape_cast %125 : vector<8xf32> to vector<8x1xf32>
    %127 = tpu.reciprocal %126 : vector<8x1xf32> -> vector<8x1xf32>
    %128 = vector.broadcast %127 : vector<8x1xf32> to vector<8x2xf32>
    %129 = arith.mulf %124, %128 : vector<8x2xf32>
    %130 = vector.extract_strided_slice %129 {offsets = [0, 0], sizes = [2, 2], strides = [1, 1]} : vector<8x2xf32> to vector<2x2xf32>
    %c0_40 = arith.constant 0 : index
    %c0_41 = arith.constant 0 : index
    %131 = vector.load %arg3[%c0_40, %c0_41] : memref<2x2xf32, #tpu.memory_space<vmem>>, vector<2x2xf32>
    tpu.vector_store %arg3[%c0_40, %c0_41], %130 {strides = array<i32>} : memref<2x2xf32, #tpu.memory_space<vmem>>, vector<2x2xf32>,
    return
  }
}

</mosaic_0001>

<bundles_post_ra>
// kernel: rnn_net_forward.1
= control target key start
LH: loop header
LB: loop body
LE: loop exit
PB: predicated region body
PF: predicated region fallthrough
CT: control target
= control target key end

     0   :  { %v1742_v1 = vmov 0.0   ;;  %vm1743_vm0 = vmmov 0   ;;  %vm79_vm1 = vcmask 261120   ;;  %v1744_v7 = vmov 0   ;;  %s2045_s0 = inlined_call_operand.vmem [shape: bf16[64,32], index: 0, kind: input, shape index: {}]   ;;  %s2046_s1 = inlined_call_operand.vmem [shape: bf16[160,32], index: 1, kind: input, shape index: {}]   ;;  %s2047_s2 = inlined_call_operand.vmem [shape: f32[24,32], index: 2, kind: input, shape index: {}]   ;;  %s2048_s3 = inlined_call_operand.hbm [shape: f32[2,2], index: 3, kind: output, shape index: {}]  }
   0x1   :  { %v1670_v0 = vld [vmem:[%s2046_s1 + $0x8] sm:$0xff]   ;;  %1466 = vmatprep.subr.bf16.mxu1 %v1742_v1  ;;  %v1773_v2 = vld [vmem:[%s2046_s1 + $0x18] sm:$0xff]   ;;  %v1672_v3 = vld [vmem:[%s2046_s1] sm:$0xff]   ;;  %1470 = vmatprep.mubr.msk.bf16.mxu1 %vm1743_vm0, %v1742_v1 }
   0x2   :  { %1454 = vmatprep.subr.bf16.mxu0 %v1670_v0  ;;  %1467 = vmatpush3.bf16.msra.mxu1 %v1773_v2  ;;  %v1784_v4 = vld [vmem:[%s2046_s1 + $0x10] sm:$0xff]   ;;  %v1674_v5 = vld [vmem:[%s2045_s0] sm:$0xff]   ;;  %v1675_v6 = vld [vmem:[%s2045_s0 + $0x8] sm:$0xff]  }
   0x3   :  { %1455 = vmatpush3.bf16.msra.mxu0 %v1670_v0  ;;  %1468 = vmatprep.subr.bf16.mxu1 %v1742_v1 }
   0x4   :  { %1456 = vmatprep.subr.bf16.mxu0 %v1672_v3  ;;  %1458 = vmatprep.mubr.msk.bf16.mxu0 %vm79_vm1, %v1674_v5 }
   0x6   :  { %1469 = vmatpush3.bf16.msra.mxu1 %v1784_v4 }
   0x7   :  { %1457 = vmatpush3.bf16.msra.mxu0 %v1672_v3  ;;  %1474 = vmatprep.subr.bf16.mxu1 %v1742_v1 }
   0x8   :  { %1482 = vmatprep.subr.bf16.mxu0 %v1742_v1 }
   0x9   :  { %1471 = vmatmul.mubr.bf16.vlgmr.msra.gmra.mxu1 %v1744_v7 }
   0xa   :  { %1459 = vmatmul.mubr.msk.bf16.vlgmr.msra.gmra.mxu0 %vm79_vm1, %v1675_v6  ;;  %1478 = vmatprep.mubr.msk.bf16.mxu1 %vm1743_vm0, %v1742_v1 }
   0xb   :  { %8 = vsyncpa [#allocation3], 0  ;;  %v1803_v8 = vld [vmem:[%s2046_s1 + $0x38] sm:$0xff]   ;;  %v1678_v9 = vld [vmem:[%s2045_s0 + $0x10] sm:$0xff]   ;;  %vm1304_vm2 = vcmask 15360   ;;  %vm1316_vm3 = vcmask 9216  }
   0xc   :  { %1475 = vmatpush3.bf16.msra.mxu1 %v1803_v8  ;;  %v1813_v10 = vld [vmem:[%s2046_s1 + $0x30] sm:$0xff]   ;;  %v1680_v11 = vld [vmem:[%s2045_s0 + $0x18] sm:$0xff]   ;;  %1462 = vmatprep.mubr.msk.bf16.mxu0 %vm79_vm1, %v1678_v9  ;;  %v1831_v12 = vld [vmem:[%s2046_s1 + $0x28] sm:$0xff]  }
   0xd   :  { %1476 = vmatprep.subr.bf16.mxu1 %v1742_v1  ;;  %1483 = vmatpush3.bf16.msra.mxu0 %v1831_v12  ;;  %v1840_v13 = vld [vmem:[%s2046_s1 + $0x20] sm:$0xff]   ;;  %v1877_v34 = vld [vmem:[%s2047_s2 + $0x8] sm:$0xff] }
   0xe   :  { %1484 = vmatprep.subr.bf16.mxu0 %v1742_v1  ;;  %v1849_v16 = vld [vmem:[%s2047_s2] sm:$0xff] }
  0x10   :  { %1477 = vmatpush3.bf16.msra.mxu1 %v1813_v10 }
  0x11   :  { %1490 = vmatprep.subr.bf16.mxu1 %v1742_v1  ;;  %1485 = vmatpush3.bf16.msra.mxu0 %v1840_v13 }
  0x12   :  { %1463 = vmatmul.mubr.msk.bf16.gmra.mxu0 %vm79_vm1, %v1680_v11  ;;  %1498 = vmatprep.subr.bf16.mxu0 %v1742_v1 }
  0x13   :  { %1486 = vmatprep.mubr.msk.bf16.mxu0 %vm1743_vm0, %v1742_v1  ;;  %1479 = vmatmul.mubr.bf16.vlgmr.msra.gmra.mxu1 %v1744_v7 }
  0x14   :  { %1491 = vmatpush3.bf16.msra.mxu1 %v1773_v2  ;;  %1494 = vmatprep.mubr.msk.bf16.mxu1 %vm1743_vm0, %v1742_v1 }
  0x15   :  { %1492 = vmatprep.subr.bf16.mxu1 %v1742_v1 }
  0x18   :  { %1493 = vmatpush3.bf16.msra.mxu1 %v1784_v4 }
  0x19   :  { %1506 = vmatprep.subr.bf16.mxu1 %v1742_v1 }
  0xc9   :  { %v207_v14 = vpop.f32.mrf.mxu1 }
  0xca   :  { %v1844_v15 = vpop.f32.mrf.mxu0 }
  0xcb   :  { %v1472_v17 = vpop.f32.mrf.mxu1  ;;  %v456_v61 = vadd.f32 %v1844_v15, %v1849_v16 }
  0xcc   :  { %v126_v18 = vpop.f32.mrf.mxu0 }
  0xcd   :  { %v157_v19 = vadd.f32 %v126_v18, %v1849_v16  ;;  %v210_v20 = vpop.f32.mrf.mxu1 }
  0xce   :  { %v1866_v29 = vpop.f32.mrf.mxu0 }
  0xcf   :  { %v213_v21 = vadd.f32 %v207_v14, %v157_v19  ;;  %v1473_v22 = vpop.f32.mrf.mxu1 }
  0xd0   :  { %v129_v30 = vpop.f32.mrf.mxu0  ;;  %v588_v22 = vadd.f32 %v1866_v29, %v1849_v16 }
  0xd1   :  { %1684 = vtanh.f32 %v213_v21  ;;  %v324_v36 = vadd.f32 %v129_v30, %v1849_v16 }
  0xd2   :  { %v1868_v31 = vpop.f32.mrf.mxu0 }
  0xd3   :  { %v262_v25 = vpop.f32.mrf.mxu1 }
  0xd4   :  { %v1870_v32 = vpop.f32.mrf.mxu0  ;;  %v263_v37 = vadd.f32 %v262_v25, %v1877_v34 }
  0xd5   :  { %v1480_v26 = vpop.f32.mrf.mxu1 }
  0xd6   :  { %v1872_v33 = vpop.f32.mrf.mxu0 }
  0xd7   :  { %v265_v27 = vpop.f32.mrf.mxu1 }
  0xd8   :  { %v1879_v35 = vpop.f32.mrf.mxu0 }
  0xd9   :  { %v1481_v28 = vpop.f32.mrf.mxu1 }
  0xde   :  { %v1685_v23 = vpop.eup %1684 }
  0xdf   :  { %v215_v24 = vpack.c.bf16 %v1685_v23, %v1685_v23 }
  0xe1   :  { %1487 = vmatmul.mubr.msk.bf16.vlgmr.msra.gmra.mxu0 %vm79_vm1, %v215_v24  ;;  %1495 = vmatmul.mubr.msk.bf16.vlgmr.msra.gmra.mxu1 %vm79_vm1, %v215_v24 }
  0xe2   :  { %1499 = vmatpush3.bf16.msra.mxu0 %v1803_v8  ;;  %1507 = vmatpush3.bf16.msra.mxu1 %v1831_v12 }
  0xe3   :  { %1500 = vmatprep.subr.bf16.mxu0 %v1742_v1  ;;  %1508 = vmatprep.subr.bf16.mxu1 %v1742_v1 }
  0xe4   :  { %1502 = vmatprep.mubr.msk.bf16.mxu0 %vm1743_vm0, %v1742_v1  ;;  %1510 = vmatprep.mubr.msk.bf16.mxu1 %vm1743_vm0, %v1742_v1 }
  0xe6   :  { %1501 = vmatpush3.bf16.msra.mxu0 %v1813_v10  ;;  %1509 = vmatpush3.bf16.msra.mxu1 %v1840_v13 }
  0xe7   :  { %1514 = vmatprep.subr.bf16.mxu0 %v1742_v1  ;;  %1522 = vmatprep.subr.bf16.mxu1 %v1742_v1 }
 0x1a1   :  { %v317_v38 = vpop.f32.mrf.mxu0  ;;  %v359_v39 = vpop.f32.mrf.mxu1 }
 0x1a2   :  { %v318_v40 = vadd.f32 %v317_v38, %v263_v37  ;;  %v365_v41 = vadd.f32 %v359_v39, %v324_v36 }
 0x1a3   :  { %v1488_v42 = vpop.f32.mrf.mxu0  ;;  %v1496_v43 = vpop.f32.mrf.mxu1 }
 0x1a4   :  { %1686 = vtanh.f32 %v318_v40 }
 0x1a5   :  { %1688 = vtanh.f32 %v365_v41  ;;  %v320_v44 = vpop.f32.mrf.mxu0  ;;  %v362_v45 = vpop.f32.mrf.mxu1 }
 0x1a7   :  { %v1489_v46 = vpop.f32.mrf.mxu0  ;;  %v1497_v47 = vpop.f32.mrf.mxu1 }
 0x1b1   :  { %v1687_v48 = vpop.eup %1686 }
 0x1b2   :  { %v1689_v49 = vpop.eup %1688  ;;  %v368_v50 = vpack.c.bf16 %v1687_v48, %v1687_v48 }
 0x1b3   :  { %v367_v51 = vpack.c.bf16 %v1689_v49, %v1689_v49 }
 0x1b4   :  { %1503 = vmatmul.mubr.msk.bf16.vlgmr.msra.gmra.mxu0 %vm79_vm1, %v368_v50  ;;  %v720_v50 = vadd.f32 %v1870_v32, %v1849_v16 }
 0x1b5   :  { %1511 = vmatmul.mubr.msk.bf16.vlgmr.msra.gmra.mxu1 %vm79_vm1, %v367_v51  ;;  %1515 = vmatpush3.bf16.msra.mxu0 %v1773_v2 }
 0x1b6   :  { %1516 = vmatprep.subr.bf16.mxu0 %v1742_v1  ;;  %1518 = vmatprep.mubr.msk.bf16.mxu0 %vm1743_vm0, %v1742_v1 }
 0x1b7   :  { %1523 = vmatpush3.bf16.msra.mxu1 %v1803_v8  ;;  %1526 = vmatprep.mubr.msk.bf16.mxu1 %vm1743_vm0, %v1742_v1 }
 0x1b8   :  { %1524 = vmatprep.subr.bf16.mxu1 %v1742_v1 }
 0x1b9   :  { %1517 = vmatpush3.bf16.msra.mxu0 %v1784_v4 }
 0x1ba   :  { %1530 = vmatprep.subr.bf16.mxu0 %v1742_v1 }
 0x1bb   :  { %1525 = vmatpush3.bf16.msra.mxu1 %v1813_v10 }
 0x1bc   :  { %1519 = vmatmul.mubr.msk.bf16.vlgmr.msra.gmra.mxu0 %vm79_vm1, %v367_v51  ;;  %1538 = vmatprep.subr.bf16.mxu1 %v1742_v1 }
 0x1bd   :  { %1531 = vmatpush3.bf16.msra.mxu0 %v1831_v12  ;;  %1534 = vmatprep.mubr.msk.bf16.mxu0 %vm1743_vm0, %v1742_v1 }
 0x1be   :  { %1532 = vmatprep.subr.bf16.mxu0 %v1742_v1 }
 0x1c1   :  { %1533 = vmatpush3.bf16.msra.mxu0 %v1840_v13 }
 0x1c2   :  { %1546 = vmatprep.subr.bf16.mxu0 %v1742_v1 }
 0x274   :  { %v406_v52 = vpop.f32.mrf.mxu0 }
 0x275   :  { %v407_v53 = vadd.f32 %v406_v52, %v1877_v34  ;;  %v449_v54 = vpop.f32.mrf.mxu1 }
 0x276   :  { %v1504_v55 = vpop.f32.mrf.mxu0 }
 0x277   :  { %v450_v56 = vadd.f32 %v449_v54, %v407_v53  ;;  %v1512_v57 = vpop.f32.mrf.mxu1 }
 0x278   :  { %v409_v58 = vpop.f32.mrf.mxu0 }
 0x279   :  { %1690 = vtanh.f32 %v450_v56  ;;  %v452_v59 = vpop.f32.mrf.mxu1 }
 0x27a   :  { %v1505_v60 = vpop.f32.mrf.mxu0 }
 0x27b   :  { %v1513_v62 = vpop.f32.mrf.mxu1 }
 0x27c   :  { %v491_v63 = vpop.f32.mrf.mxu0 }
 0x27d   :  { %v497_v0 = vadd.f32 %v491_v63, %v456_v61 }
 0x27e   :  { %v1520_v3 = vpop.f32.mrf.mxu0 }
 0x27f   :  { %1692 = vtanh.f32 %v497_v0 }
 0x280   :  { %v494_v5 = vpop.f32.mrf.mxu0 }
 0x281   :  { %v852_v5 = vadd.f32 %v1879_v35, %v1849_v16 }
 0x282   :  { %v1521_v6 = vpop.f32.mrf.mxu0 }
 0x286   :  { %v1691_v7 = vpop.eup %1690 }
 0x287   :  { %v500_v9 = vpack.c.bf16 %v1691_v7, %v1691_v7 }
 0x289   :  { %1527 = vmatmul.mubr.msk.bf16.vlgmr.msra.gmra.mxu1 %vm79_vm1, %v500_v9 }
 0x28a   :  { %1539 = vmatpush3.bf16.msra.mxu1 %v1773_v2  ;;  %1542 = vmatprep.mubr.msk.bf16.mxu1 %vm1743_vm0, %v1742_v1 }
 0x28b   :  { %1540 = vmatprep.subr.bf16.mxu1 %v1742_v1 }
 0x28c   :  { %v1693_v11 = vpop.eup %1692 }
 0x28d   :  { %v499_v14 = vpack.c.bf16 %v1693_v11, %v1693_v11 }
 0x28e   :  { %1541 = vmatpush3.bf16.msra.mxu1 %v1784_v4 }
 0x28f   :  { %1535 = vmatmul.mubr.msk.bf16.vlgmr.msra.gmra.mxu0 %vm79_vm1, %v499_v14  ;;  %1554 = vmatprep.subr.bf16.mxu1 %v1742_v1 }
 0x290   :  { %1547 = vmatpush3.bf16.msra.mxu0 %v1803_v8  ;;  %1550 = vmatprep.mubr.msk.bf16.mxu0 %vm1743_vm0, %v1742_v1 }
 0x291   :  { %1543 = vmatmul.mubr.msk.bf16.vlgmr.msra.gmra.mxu1 %vm79_vm1, %v499_v14  ;;  %1548 = vmatprep.subr.bf16.mxu0 %v1742_v1 }
 0x292   :  { %1555 = vmatpush3.bf16.msra.mxu1 %v1831_v12  ;;  %1558 = vmatprep.mubr.msk.bf16.mxu1 %vm1743_vm0, %v1742_v1 }
 0x293   :  { %1556 = vmatprep.subr.bf16.mxu1 %v1742_v1 }
 0x294   :  { %1549 = vmatpush3.bf16.msra.mxu0 %v1813_v10 }
 0x295   :  { %1562 = vmatprep.subr.bf16.mxu0 %v1742_v1 }
 0x296   :  { %1557 = vmatpush3.bf16.msra.mxu1 %v1840_v13 }
 0x297   :  { %1570 = vmatprep.subr.bf16.mxu1 %v1742_v1 }
 0x349   :  { %v538_v15 = vpop.f32.mrf.mxu1 }
 0x34a   :  { %v539_v19 = vadd.f32 %v538_v15, %v1877_v34 }
 0x34b   :  { %v1528_v17 = vpop.f32.mrf.mxu1 }
 0x34d   :  { %v541_v18 = vpop.f32.mrf.mxu1 }
 0x34f   :  { %v1529_v20 = vpop.f32.mrf.mxu1  ;;  %v581_v21 = vpop.f32.mrf.mxu0 }
 0x350   :  { %v582_v23 = vadd.f32 %v581_v21, %v539_v19 }
 0x351   :  { %v1536_v24 = vpop.f32.mrf.mxu0  ;;  %v623_v25 = vpop.f32.mrf.mxu1 }
 0x352   :  { %1694 = vtanh.f32 %v582_v23  ;;  %v629_v26 = vadd.f32 %v623_v25, %v588_v22 }
 0x353   :  { %v584_v27 = vpop.f32.mrf.mxu0  ;;  %v1544_v28 = vpop.f32.mrf.mxu1 }
 0x354   :  { %1696 = vtanh.f32 %v629_v26 }
 0x355   :  { %v1537_v30 = vpop.f32.mrf.mxu0  ;;  %v626_v36 = vpop.f32.mrf.mxu1 }
 0x357   :  { %v1545_v37 = vpop.f32.mrf.mxu1 }
 0x35f   :  { %v1695_v38 = vpop.eup %1694 }
 0x360   :  { %v632_v39 = vpack.c.bf16 %v1695_v38, %v1695_v38  ;;  %v984_v38 = vadd.f32 %v1868_v31, %v1849_v16 }
 0x361   :  { %v1697_v40 = vpop.eup %1696 }
 0x362   :  { %v631_v41 = vpack.c.bf16 %v1697_v40, %v1697_v40  ;;  %1551 = vmatmul.mubr.msk.bf16.vlgmr.msra.gmra.mxu0 %vm79_vm1, %v632_v39 }
 0x363   :  { %1563 = vmatpush3.bf16.msra.mxu0 %v1773_v2  ;;  %1566 = vmatprep.mubr.msk.bf16.mxu0 %vm1743_vm0, %v1742_v1 }
 0x364   :  { %1559 = vmatmul.mubr.msk.bf16.vlgmr.msra.gmra.mxu1 %vm79_vm1, %v631_v41  ;;  %1564 = vmatprep.subr.bf16.mxu0 %v1742_v1 }
 0x365   :  { %1571 = vmatpush3.bf16.msra.mxu1 %v1803_v8  ;;  %1574 = vmatprep.mubr.msk.bf16.mxu1 %vm1743_vm0, %v1742_v1 }
 0x366   :  { %1572 = vmatprep.subr.bf16.mxu1 %v1742_v1 }
 0x367   :  { %1565 = vmatpush3.bf16.msra.mxu0 %v1784_v4 }
 0x368   :  { %1578 = vmatprep.subr.bf16.mxu0 %v1742_v1 }
 0x369   :  { %1573 = vmatpush3.bf16.msra.mxu1 %v1813_v10 }
 0x36a   :  { %1567 = vmatmul.mubr.msk.bf16.vlgmr.msra.gmra.mxu0 %vm79_vm1, %v631_v41  ;;  %1586 = vmatprep.subr.bf16.mxu1 %v1742_v1 }
 0x36b   :  { %1579 = vmatpush3.bf16.msra.mxu0 %v1831_v12  ;;  %1582 = vmatprep.mubr.msk.bf16.mxu0 %vm1743_vm0, %v1742_v1 }
 0x36c   :  { %1580 = vmatprep.subr.bf16.mxu0 %v1742_v1 }
 0x36f   :  { %1581 = vmatpush3.bf16.msra.mxu0 %v1840_v13 }
 0x370   :  { %1594 = vmatprep.subr.bf16.mxu0 %v1742_v1 }
 0x422   :  { %v670_v29 = vpop.f32.mrf.mxu0 }
 0x423   :  { %v671_v42 = vadd.f32 %v670_v29, %v1877_v34 }
 0x424   :  { %v1552_v43 = vpop.f32.mrf.mxu0  ;;  %v713_v44 = vpop.f32.mrf.mxu1 }
 0x425   :  { %v714_v45 = vadd.f32 %v713_v44, %v671_v42 }
 0x426   :  { %v673_v46 = vpop.f32.mrf.mxu0  ;;  %v1560_v47 = vpop.f32.mrf.mxu1 }
 0x427   :  { %1698 = vtanh.f32 %v714_v45 }
 0x428   :  { %v1553_v48 = vpop.f32.mrf.mxu0  ;;  %v716_v49 = vpop.f32.mrf.mxu1 }
 0x42a   :  { %v1561_v51 = vpop.f32.mrf.mxu1  ;;  %v755_v52 = vpop.f32.mrf.mxu0 }
 0x42b   :  { %v761_v53 = vadd.f32 %v755_v52, %v720_v50 }
 0x42c   :  { %v1568_v54 = vpop.f32.mrf.mxu0 }
 0x42d   :  { %1700 = vtanh.f32 %v761_v53 }
 0x42e   :  { %v758_v55 = vpop.f32.mrf.mxu0 }
 0x430   :  { %v1569_v56 = vpop.f32.mrf.mxu0 }
 0x434   :  { %v1699_v57 = vpop.eup %1698 }
 0x435   :  { %v764_v58 = vpack.c.bf16 %v1699_v57, %v1699_v57 }
 0x437   :  { %1575 = vmatmul.mubr.msk.bf16.vlgmr.msra.gmra.mxu1 %vm79_vm1, %v764_v58 }
 0x438   :  { %1587 = vmatpush3.bf16.msra.mxu1 %v1773_v2  ;;  %1590 = vmatprep.mubr.msk.bf16.mxu1 %vm1743_vm0, %v1742_v1 }
 0x439   :  { %1588 = vmatprep.subr.bf16.mxu1 %v1742_v1 }
 0x43a   :  { %v1701_v59 = vpop.eup %1700 }
 0x43b   :  { %v763_v32 = vpack.c.bf16 %v1701_v59, %v1701_v59 }
 0x43c   :  { %1589 = vmatpush3.bf16.msra.mxu1 %v1784_v4 }
 0x43d   :  { %1583 = vmatmul.mubr.msk.bf16.vlgmr.msra.gmra.mxu0 %vm79_vm1, %v763_v32  ;;  %1602 = vmatprep.subr.bf16.mxu1 %v1742_v1 }
 0x43e   :  { %1595 = vmatpush3.bf16.msra.mxu0 %v1803_v8  ;;  %1598 = vmatprep.mubr.msk.bf16.mxu0 %vm1743_vm0, %v1742_v1 }
 0x43f   :  { %1591 = vmatmul.mubr.msk.bf16.vlgmr.msra.gmra.mxu1 %vm79_vm1, %v763_v32  ;;  %1596 = vmatprep.subr.bf16.mxu0 %v1742_v1 }
 0x440   :  { %1603 = vmatpush3.bf16.msra.mxu1 %v1831_v12  ;;  %1606 = vmatprep.mubr.msk.bf16.mxu1 %vm1743_vm0, %v1742_v1 }
 0x441   :  { %1604 = vmatprep.subr.bf16.mxu1 %v1742_v1 }
 0x442   :  { %1597 = vmatpush3.bf16.msra.mxu0 %v1813_v10 }
 0x443   :  { %1610 = vmatprep.subr.bf16.mxu0 %v1742_v1 }
 0x444   :  { %1605 = vmatpush3.bf16.msra.mxu1 %v1840_v13 }
 0x445   :  { %1618 = vmatprep.subr.bf16.mxu1 %v1742_v1 }
 0x4f7   :  { %v802_v60 = vpop.f32.mrf.mxu1 }
 0x4f8   :  { %v803_v63 = vadd.f32 %v802_v60, %v1877_v34 }
 0x4f9   :  { %v1576_v61 = vpop.f32.mrf.mxu1 }
 0x4fb   :  { %v805_v62 = vpop.f32.mrf.mxu1 }
 0x4fd   :  { %v1577_v0 = vpop.f32.mrf.mxu1  ;;  %v845_v3 = vpop.f32.mrf.mxu0 }
 0x4fe   :  { %v846_v6 = vadd.f32 %v845_v3, %v803_v63 }
 0x4ff   :  { %v1584_v7 = vpop.f32.mrf.mxu0  ;;  %v887_v9 = vpop.f32.mrf.mxu1 }
 0x500   :  { %1702 = vtanh.f32 %v846_v6  ;;  %v893_v11 = vadd.f32 %v887_v9, %v852_v5 }
 0x501   :  { %v848_v14 = vpop.f32.mrf.mxu0  ;;  %v1592_v15 = vpop.f32.mrf.mxu1 }
 0x502   :  { %1704 = vtanh.f32 %v893_v11 }
 0x503   :  { %v1585_v17 = vpop.f32.mrf.mxu0  ;;  %v890_v18 = vpop.f32.mrf.mxu1 }
 0x505   :  { %v1593_v19 = vpop.f32.mrf.mxu1 }
 0x50d   :  { %v1703_v20 = vpop.eup %1702 }
 0x50e   :  { %v896_v21 = vpack.c.bf16 %v1703_v20, %v1703_v20 }
 0x50f   :  { %v1705_v22 = vpop.eup %1704 }
 0x510   :  { %v895_v23 = vpack.c.bf16 %v1705_v22, %v1705_v22  ;;  %1599 = vmatmul.mubr.msk.bf16.vlgmr.msra.gmra.mxu0 %vm79_vm1, %v896_v21 }
 0x511   :  { %1611 = vmatpush3.bf16.msra.mxu0 %v1773_v2  ;;  %1614 = vmatprep.mubr.msk.bf16.mxu0 %vm1743_vm0, %v1742_v1 }
 0x512   :  { %1607 = vmatmul.mubr.msk.bf16.vlgmr.msra.gmra.mxu1 %vm79_vm1, %v895_v23  ;;  %1612 = vmatprep.subr.bf16.mxu0 %v1742_v1 }
 0x513   :  { %1619 = vmatpush3.bf16.msra.mxu1 %v1803_v8  ;;  %1622 = vmatprep.mubr.msk.bf16.mxu1 %vm1743_vm0, %v1742_v1 }
 0x514   :  { %1620 = vmatprep.subr.bf16.mxu1 %v1742_v1 }
 0x515   :  { %1613 = vmatpush3.bf16.msra.mxu0 %v1784_v4 }
 0x516   :  { %1626 = vmatprep.subr.bf16.mxu0 %v1742_v1 }
 0x517   :  { %1621 = vmatpush3.bf16.msra.mxu1 %v1813_v10 }
 0x518   :  { %1615 = vmatmul.mubr.msk.bf16.vlgmr.msra.gmra.mxu0 %vm79_vm1, %v895_v23  ;;  %1634 = vmatprep.subr.bf16.mxu1 %v1742_v1 }
 0x519   :  { %1627 = vmatpush3.bf16.msra.mxu0 %v1831_v12  ;;  %1630 = vmatprep.mubr.msk.bf16.mxu0 %vm1743_vm0, %v1742_v1 }
 0x51a   :  { %1628 = vmatprep.subr.bf16.mxu0 %v1742_v1 }
 0x51d   :  { %1629 = vmatpush3.bf16.msra.mxu0 %v1840_v13 }
 0x51e   :  { %1642 = vmatprep.subr.bf16.mxu0 %v1742_v1 }
 0x5d0   :  { %v934_v35 = vpop.f32.mrf.mxu0 }
 0x5d1   :  { %v935_v24 = vadd.f32 %v934_v35, %v1877_v34 }
 0x5d2   :  { %v1600_v25 = vpop.f32.mrf.mxu0  ;;  %v977_v26 = vpop.f32.mrf.mxu1 }
 0x5d3   :  { %v978_v27 = vadd.f32 %v977_v26, %v935_v24 }
 0x5d4   :  { %v937_v28 = vpop.f32.mrf.mxu0  ;;  %v1608_v30 = vpop.f32.mrf.mxu1 }
 0x5d5   :  { %1706 = vtanh.f32 %v978_v27 }
 0x5d6   :  { %v1601_v36 = vpop.f32.mrf.mxu0  ;;  %v980_v37 = vpop.f32.mrf.mxu1 }
 0x5d8   :  { %v1609_v39 = vpop.f32.mrf.mxu1  ;;  %v1019_v40 = vpop.f32.mrf.mxu0 }
 0x5d9   :  { %v1025_v41 = vadd.f32 %v1019_v40, %v984_v38 }
 0x5da   :  { %v1616_v29 = vpop.f32.mrf.mxu0 }
 0x5db   :  { %1708 = vtanh.f32 %v1025_v41 }
 0x5dc   :  { %v1022_v42 = vpop.f32.mrf.mxu0 }
 0x5de   :  { %v1617_v43 = vpop.f32.mrf.mxu0 }
 0x5e2   :  { %v1707_v44 = vpop.eup %1706 }
 0x5e3   :  { %v1028_v45 = vpack.c.bf16 %v1707_v44, %v1707_v44 }
 0x5e5   :  { %1623 = vmatmul.mubr.msk.bf16.vlgmr.msra.gmra.mxu1 %vm79_vm1, %v1028_v45 }
 0x5e6   :  { %1635 = vmatpush3.bf16.msra.mxu1 %v1773_v2  ;;  %1638 = vmatprep.mubr.msk.bf16.mxu1 %vm1743_vm0, %v1742_v1 }
 0x5e7   :  { %1636 = vmatprep.subr.bf16.mxu1 %v1742_v1 }
 0x5e8   :  { %v1709_v46 = vpop.eup %1708 }
 0x5e9   :  { %v1027_v31 = vpack.c.bf16 %v1709_v46, %v1709_v46 }
 0x5ea   :  { %1637 = vmatpush3.bf16.msra.mxu1 %v1784_v4 }
 0x5eb   :  { %1631 = vmatmul.mubr.msk.bf16.vlgmr.msra.gmra.mxu0 %vm79_vm1, %v1027_v31  ;;  %1650 = vmatprep.subr.bf16.mxu1 %v1742_v1 }
 0x5ec   :  { %1643 = vmatpush3.bf16.msra.mxu0 %v1803_v8  ;;  %1646 = vmatprep.mubr.msk.bf16.mxu0 %vm1743_vm0, %v1742_v1 }
 0x5ed   :  { %1639 = vmatmul.mubr.msk.bf16.vlgmr.msra.gmra.mxu1 %vm79_vm1, %v1027_v31  ;;  %1644 = vmatprep.subr.bf16.mxu0 %v1742_v1 }
 0x5ee   :  { %1651 = vmatpush3.bf16.msra.mxu1 %v1831_v12  ;;  %1654 = vmatprep.mubr.msk.bf16.mxu1 %vm1743_vm0, %v1742_v1  ;;  %v1116_v12 = vadd.f32 %v1872_v33, %v1849_v16  ;;  %v1682_v16 = vld [vmem:[%s2046_s1 + $0x48] sm:$0xff]   ;;  %v1683_v33 = vld [vmem:[%s2046_s1 + $0x40] sm:$0xff]   ;;  %s1745_s1 = smov [#allocation2]  }
 0x5ef   :  { %1652 = vmatprep.subr.bf16.mxu1 %v1742_v1  ;;  %s1324_s18 = sshll.u32 %s1745_s1, 4  ;;  %s1325_s18 = int_to_ptr.vmem [resolvable:$true] %s1324_s18 }
 0x5f0   :  { %1645 = vmatpush3.bf16.msra.mxu0 %v1813_v10  ;;  %p1725_p1 = scmp.lt.s32.totalorder %s1325_s18, %s1325_s18 }
 0x5f1   :  { %1658 = vmatprep.subr.bf16.mxu0 %v1742_v1 }
 0x5f2   :  { %1653 = vmatpush3.bf16.msra.mxu1 %v1840_v13 }
 0x6a5   :  { %v1066_v2 = vpop.f32.mrf.mxu1 }
 0x6a6   :  { %v1067_v47 = vadd.f32 %v1066_v2, %v1877_v34 }
 0x6a7   :  { %v1624_v4 = vpop.f32.mrf.mxu1 }
 0x6a9   :  { %v1069_v8 = vpop.f32.mrf.mxu1 }
 0x6ab   :  { %v1625_v48 = vpop.f32.mrf.mxu1  ;;  %v1109_v49 = vpop.f32.mrf.mxu0 }
 0x6ac   :  { %v1110_v50 = vadd.f32 %v1109_v49, %v1067_v47 }
 0x6ad   :  { %v1632_v51 = vpop.f32.mrf.mxu0  ;;  %v1151_v52 = vpop.f32.mrf.mxu1 }
 0x6ae   :  { %1710 = vtanh.f32 %v1110_v50  ;;  %v1157_v53 = vadd.f32 %v1151_v52, %v1116_v12 }
 0x6af   :  { %v1112_v10 = vpop.f32.mrf.mxu0  ;;  %v1640_v54 = vpop.f32.mrf.mxu1 }
 0x6b0   :  { %1712 = vtanh.f32 %v1157_v53 }
 0x6b1   :  { %v1633_v55 = vpop.f32.mrf.mxu0  ;;  %v1154_v13 = vpop.f32.mrf.mxu1 }
 0x6b3   :  { %v1641_v56 = vpop.f32.mrf.mxu1 }
 0x6bb   :  { %v1711_v57 = vpop.eup %1710 }
 0x6bc   :  { %v1160_v58 = vpack.c.bf16 %v1711_v57, %v1711_v57 }
 0x6bd   :  { %v1713_v59 = vpop.eup %1712 }
 0x6be   :  { %v1159_v32 = vpack.c.bf16 %v1713_v59, %v1713_v59  ;;  %1647 = vmatmul.mubr.msk.bf16.vlgmr.msra.gmra.mxu0 %vm79_vm1, %v1160_v58 }
 0x6bf   :  { %1662 = vmatprep.mubr.msk.bf16.mxu0 %vm1743_vm0, %v1742_v1  ;;  %1659 = vmatpush3.bf16.msra.mxu0 %v1682_v16 }
 0x6c0   :  { %1655 = vmatmul.mubr.msk.bf16.vlgmr.msra.gmra.mxu1 %vm79_vm1, %v1159_v32  ;;  %1660 = vmatprep.subr.bf16.mxu0 %v1742_v1  ;;  %v38_v1 = vld [vmem:[%s2047_s2 + $0x10] sm:$0xff]  ;;  %s1720_s2 = scalar_lea.vmem %s1325_s18, 32 }
 0x6c1   :  { %p1721_p0 = scmp.ne.s32.totalorder %s1325_s18, %s1720_s2  ;;  %p1726_p2 = scmp.lt.s32.totalorder %s1720_s2, %s1720_s2 }
 0x6c3   :  { %1661 = vmatpush3.bf16.msra.mxu0 %v1683_v33  ;;  %p1727_p3 = por %p1726_p2, %p1725_p1 }
 0x6c5   :  { %p1728_p4 = pnand %p1727_p3, %p1721_p0 }
 0x77e   :  { %v1198_v60 = vpop.f32.mrf.mxu0 }
 0x77f   :  { %v1199_v61 = vadd.f32 %v1198_v60, %v1877_v34 }
 0x780   :  { %v1648_v62 = vpop.f32.mrf.mxu0  ;;  %v1241_v63 = vpop.f32.mrf.mxu1 }
 0x781   :  { %v1242_v0 = vadd.f32 %v1241_v63, %v1199_v61 }
 0x782   :  { %v1201_v3 = vpop.f32.mrf.mxu0  ;;  %v1656_v5 = vpop.f32.mrf.mxu1 }
 0x783   :  { %1714 = vtanh.f32 %v1242_v0 }
 0x784   :  { %v1649_v6 = vpop.f32.mrf.mxu0  ;;  %v1244_v7 = vpop.f32.mrf.mxu1 }
 0x786   :  { %v1657_v9 = vpop.f32.mrf.mxu1 }
 0x790   :  { %v1715_v11 = vpop.eup %1714 }
 0x791   :  { %v1248_v14 = vpack.c.bf16 %v1715_v11, %v1715_v11 }
 0x793   :  { %1663 = vmatmul.mubr.msk.bf16.vlgmr.msra.gmra.mxu0 %vm79_vm1, %v1248_v14 }
 0x853   :  { %v1298_v15 = vpop.f32.mrf.mxu0 }
 0x854   :  { %v1299_v34 = vadd.f32 %v1298_v15, %v38_v1 }
 0x855   :  { %v1664_v17 = vpop.f32.mrf.mxu0 }
 0x856   :  { %v1305_v18 = vsel %vm1304_vm2, %v1299_v34, -inf }
 0x857   :  { %1306 = vmax.xlane.f32.xlu0 %v1305_v18  ;;  %v1301_v19 = vpop.f32.mrf.mxu0 }
 0x859   :  { %v1665_v20 = vpop.f32.mrf.mxu0 }
 0x8e0   :  { %v1307_v21 = vpop.xlane.xlu0 %1306 }
 0x8e1   :  { %v1308_v22 = vsub.f32 %v1299_v34, %v1307_v21 }
 0x8e3   :  { %v1309_v23 = vmul.f32 1.442695, %v1308_v22 }
 0x8e5   :  { %1716 = vpow2.f32 %v1309_v23 }
 0x8f2   :  { %v1717_v35 = vpop.eup %1716 }
 0x8f3   :  { %v1311_v24 = vsel %vm1304_vm2, %v1717_v35, 0.0 }
 0x8f4   :  { %1312 = vadd.xlane.f32.xlu0 %v1311_v24 }
 0x97d   :  { %v1313_v25 = vpop.xlane.xlu0 %1312 }
 0x97e   :  { %1718 = vrcp.f32 %v1313_v25 }
 0x98b   :  { %v1719_v26 = vpop.eup %1718 }
 0x98c   :  { %v1315_v27 = vmul.f32 %v1719_v26, %v1717_v35 }
 0x98e   :  { %1317 = vst.msk [vmem:[#allocation2] sm:$0x3] %vm1316_vm3, %v1315_v27 }
 0x98f   :  { %1731 = shalt.err (!%p1728_p4)
}
 0x990   :  { %1327 = dma.vmem_to_hbm [thread:$0]  %s1325_s18, 32, %s2048_s3, [#allocation3]  }
 0x991   :  { %1740 = dma.done.wait [#allocation3], 32  }
 0x992   :  { %1741 = vsyncadd [#allocation3], 4294967264 }
 0x993   :  { %1331 = vsyncpa [#allocation3], 1 }

</bundles_post_ra>
